<compile_context>
chip_gen: v7x
topology: tpu7x:2x2x1
jax: 0.10.0
libtpu: 0.0.40
codegen_flags: <defaults>
</compile_context>

<pallas_src>
import functools

import jax
import jax.numpy as jnp
from jax import lax
from jax.experimental import pallas as pl
from jax.experimental.pallas import tpu as pltpu


_TARGET_BLOCK_BYTES = 3 * 1024 * 1024        # ~3 MiB block; x4 (dbl-buffered in+out) = 12 MiB
_VMEM_LIMIT_BYTES = 32 * 1024 * 1024         # safe on v7x (64 MiB) and v5e/v6e (128 MiB)
_MAX_SINGLE_BLOCK_BYTES = _VMEM_LIMIT_BYTES // 5   # block cap before two-pass fallback
_MIN_GRID_STEPS = 8                          # >= 4 steps/TensorCore on v7x for overlap


def _round_up(x, m):
    return -(-x // m) * m


def _round_down(x, m):
    return (x // m) * m


# ----------------------------------------------------------------------------
# Single-pass kernel: block = (tile_rows, H*W); reduce over the lane axis.
# ----------------------------------------------------------------------------
def _zm_bn_kernel(x_ref, o_ref):
    xf = x_ref[...].astype(jnp.float32)
    mean = jnp.sum(xf, axis=-1, keepdims=True) * (1.0 / x_ref.shape[-1])
    o_ref[...] = (xf - mean).astype(o_ref.dtype)


# ----------------------------------------------------------------------------
# Two-pass fallback for very large H*W (H*W tiled on an "arbitrary" grid axis).
# ----------------------------------------------------------------------------
def _row_mean_kernel(x_ref, mean_ref, *, hw_total, hw_tile):
    j = pl.program_id(1)

    @pl.when(j == 0)
    def _():
        mean_ref[...] = jnp.zeros_like(mean_ref)

    xf = x_ref[...].astype(jnp.float32)
    # Mask out-of-range columns of a ragged last H*W tile.
    col = j * hw_tile + lax.broadcasted_iota(jnp.int32, xf.shape, 1)
    xf = jnp.where(col < hw_total, xf, 0.0)
    mean_ref[...] += jnp.sum(xf, axis=-1, keepdims=True)

    @pl.when(j == pl.num_programs(1) - 1)
    def _():
        mean_ref[...] = mean_ref[...] * (1.0 / hw_total)


def _subtract_mean_kernel(x_ref, mean_ref, o_ref):
    o_ref[...] = (x_ref[...].astype(jnp.float32) - mean_ref[...]).astype(o_ref.dtype)


# ----------------------------------------------------------------------------
# Tile selection
# ----------------------------------------------------------------------------
def _row_tile(rows, padded_hw, itemsize, pack, target_bytes):
    """Row-tile: multiple of `pack` (or == rows), sized toward target_bytes,
    capped so the grid has >= _MIN_GRID_STEPS steps."""
    if rows <= pack:
        return rows
    budget = max(pack, _round_down(target_bytes // (padded_hw * itemsize), pack))
    cap = max(pack, _round_down(pl.cdiv(rows, _MIN_GRID_STEPS), pack))
    return max(pack, min(budget, cap, _round_down(rows, pack)))


# ----------------------------------------------------------------------------
# Wrapper
# ----------------------------------------------------------------------------
def zm_bn(x, *, target_block_bytes=_TARGET_BLOCK_BYTES,
          max_single_block_bytes=_MAX_SINGLE_BLOCK_BYTES):
    """ZM_bn.forward: x - spatial_mean(x); x is NCHW."""
    N, C, H, W = x.shape
    rows, hw = N * C, H * W
    itemsize = jnp.dtype(x.dtype).itemsize
    x2 = x.reshape(rows, hw)

    pack = max(8, 32 // itemsize)          # sublane packing: 8 f32 / 16 bf16 / 32 int8
    padded_hw = _round_up(hw, 128)         # VMEM lane padding for narrow rows
    min_rows = min(rows, pack)
    min_block_bytes = min_rows * padded_hw * itemsize

    if min_block_bytes <= max_single_block_bytes:
        # --- Single pass: rows tiled, full H*W per block (1 read + 1 write) ---
        tile = _row_tile(rows, padded_hw, itemsize, pack, target_block_bytes)
        grid = (pl.cdiv(rows, tile),)
        out2 = pl.pallas_call(
            _zm_bn_kernel,
            out_shape=jax.ShapeDtypeStruct((rows, hw), x.dtype),
            grid_spec=pltpu.PrefetchScalarGridSpec(
                num_scalar_prefetch=0,
                grid=grid,
                in_specs=[pl.BlockSpec((tile, hw), lambda i: (i, 0))],
                out_specs=pl.BlockSpec((tile, hw), lambda i: (i, 0)),
            ),
            compiler_params=pltpu.CompilerParams(
                dimension_semantics=("parallel",),
                vmem_limit_bytes=_VMEM_LIMIT_BYTES,
            ),
            cost_estimate=pl.CostEstimate(
                flops=2 * rows * hw,
                transcendentals=0,
                bytes_accessed=2 * rows * hw * itemsize,
            ),
        )(x2)
        return out2.reshape(N, C, H, W)

    # --- Two-pass fallback: H*W too large for a single VMEM-resident row block.
    tile_rows = min(rows, pack)
    hw_tile = max(128, _round_down(target_block_bytes // (tile_rows * itemsize), 128))
    if hw_tile >= hw:
        hw_tile = hw
    row_grid = pl.cdiv(rows, tile_rows)
    hw_grid = pl.cdiv(hw, hw_tile)

    mean_kernel = functools.partial(_row_mean_kernel, hw_total=hw, hw_tile=hw_tile)
    means = pl.pallas_call(
        mean_kernel,
        out_shape=jax.ShapeDtypeStruct((rows, 1), jnp.float32),
        grid_spec=pltpu.PrefetchScalarGridSpec(
            num_scalar_prefetch=0,
            grid=(row_grid, hw_grid),
            in_specs=[pl.BlockSpec((tile_rows, hw_tile), lambda i, j: (i, j))],
            out_specs=pl.BlockSpec((tile_rows, 1), lambda i, j: (i, 0)),
        ),
        compiler_params=pltpu.CompilerParams(
            dimension_semantics=("parallel", "arbitrary"),
            vmem_limit_bytes=_VMEM_LIMIT_BYTES,
        ),
        cost_estimate=pl.CostEstimate(
            flops=rows * hw,
            transcendentals=0,
            bytes_accessed=rows * hw * itemsize + rows * 4,
        ),
    )(x2)

    out2 = pl.pallas_call(
        _subtract_mean_kernel,
        out_shape=jax.ShapeDtypeStruct((rows, hw), x.dtype),
        grid_spec=pltpu.PrefetchScalarGridSpec(
            num_scalar_prefetch=0,
            grid=(row_grid, hw_grid),
            in_specs=[pl.BlockSpec((tile_rows, hw_tile), lambda i, j: (i, j)),
                      pl.BlockSpec((tile_rows, 1), lambda i, j: (i, 0))],
            out_specs=pl.BlockSpec((tile_rows, hw_tile), lambda i, j: (i, j)),
        ),
        compiler_params=pltpu.CompilerParams(
            dimension_semantics=("parallel", "parallel"),
            vmem_limit_bytes=_VMEM_LIMIT_BYTES,
        ),
        cost_estimate=pl.CostEstimate(
            flops=rows * hw,
            transcendentals=0,
            bytes_accessed=2 * rows * hw * itemsize + rows * 4,
        ),
    )(x2, means)
    return out2.reshape(N, C, H, W)


if __name__ == "__main__":
    key = jax.random.PRNGKey(0)
    k1, k2, k3, k4 = jax.random.split(key, 4)

    def ref_fn(x):
        xf = x.astype(jnp.float32)
        return (xf - jnp.mean(xf, axis=(2, 3), keepdims=True)).astype(x.dtype)

    # Case 1: typical feature map, lane-aligned H*W (single-pass path).
    x1 = jax.random.normal(k1, (2, 4, 16, 16), dtype=jnp.float32)
    o1 = jax.block_until_ready(zm_bn(x1))
    assert o1.shape == x1.shape
    assert jnp.allclose(o1, ref_fn(x1), atol=1e-4, rtol=1e-5)

    # Case 2: small spatial extent (H*W = 49 < 128) — row-major path, no
    # off-kernel transposes, lane-masked stores.
    x2 = jax.random.normal(k2, (2, 64, 7, 7), dtype=jnp.float32)
    o2 = jax.block_until_ready(zm_bn(x2))
    assert o2.shape == x2.shape
    assert jnp.allclose(o2, ref_fn(x2), atol=1e-4, rtol=1e-5)

    # Case 3: force the two-pass (H*W-tiled) fallback with a tiny block budget;
    # H*W = 2040 is ragged against the 512-wide tile to exercise masking.
    x3 = jax.random.normal(k3, (2, 4, 34, 60), dtype=jnp.float32)
    o3 = jax.block_until_ready(
        zm_bn(x3, target_block_bytes=16 * 1024, max_single_block_bytes=32 * 1024))
    assert o3.shape == x3.shape
    assert jnp.allclose(o3, ref_fn(x3), atol=1e-4, rtol=1e-5)

    # Case 4: bf16 input (f32 accumulate / subtract, cast at the store).
    x4 = jax.random.normal(k4, (2, 4, 16, 16), dtype=jnp.bfloat16)
    o4 = jax.block_until_ready(zm_bn(x4))
    assert o4.shape == x4.shape and o4.dtype == x4.dtype
    assert jnp.allclose(o4.astype(jnp.float32), ref_fn(x4).astype(jnp.float32),
                        atol=3e-2, rtol=3e-2)

    print("KERNEL_OK")
</pallas_src>

<mosaic_0001>
module attributes {stable_mosaic.version = 11 : i64} {
  func.func @_zm_bn_kernel(%arg0: i32, %arg1: memref<8x256xf32, #tpu.memory_space<vmem>>, %arg2: memref<8x256xf32, #tpu.memory_space<vmem>>) attributes {dimension_semantics = [#tpu.dimension_semantics<parallel>], iteration_bounds = array<i64: 1>, scalar_prefetch = 0 : i64, scratch_operands = 0 : i64, tpu.core_type = #tpu.core_type<tc>, window_params = [{transform_indices = @transform_0, window_bounds = array<i64: 8, 256>}, {transform_indices = @transform_1, window_bounds = array<i64: 8, 256>}]} {
    %c0 = arith.constant 0 : index
    %c0_0 = arith.constant 0 : index
    %0 = vector.load %arg1[%c0, %c0_0] : memref<8x256xf32, #tpu.memory_space<vmem>>, vector<8x256xf32>
    %cst = arith.constant dense<0.000000e+00> : vector<8xf32>
    %1 = vector.multi_reduction <add>, %0, %cst [1] : vector<8x256xf32> to vector<8xf32>
    %2 = vector.shape_cast %1 : vector<8xf32> to vector<8x1xf32>
    %cst_1 = arith.constant 3.906250e-03 : f32
    %3 = vector.broadcast %cst_1 : f32 to vector<8x1xf32>
    %4 = arith.mulf %2, %3 : vector<8x1xf32>
    %5 = vector.broadcast %4 : vector<8x1xf32> to vector<8x256xf32>
    %6 = arith.subf %0, %5 : vector<8x256xf32>
    %c0_2 = arith.constant 0 : index
    %c0_3 = arith.constant 0 : index
    %7 = vector.load %arg2[%c0_2, %c0_3] : memref<8x256xf32, #tpu.memory_space<vmem>>, vector<8x256xf32>
    tpu.vector_store %arg2[%c0_2, %c0_3], %6 {strides = array<i32>} : memref<8x256xf32, #tpu.memory_space<vmem>>, vector<8x256xf32>,
    return
  }
  func.func @transform_0(%arg0: i32) -> (i32, i32) {
    %c0_i32 = arith.constant 0 : i32
    %c0_i32_0 = arith.constant 0 : i32
    return %arg0, %c0_i32 : i32, i32
  }
  func.func @transform_1(%arg0: i32) -> (i32, i32) {
    %c0_i32 = arith.constant 0 : i32
    %c0_i32_0 = arith.constant 0 : i32
    return %arg0, %c0_i32 : i32, i32
  }
}

</mosaic_0001>

<bundles_post_ra>
// kernel: tpu_custom_call.1
= control target key start
LH: loop header
LB: loop body
LE: loop exit
PB: predicated region body
PF: predicated region fallthrough
CT: control target
= control target key end

     0   :  { %6 = vsyncpa [#allocation3], 0  ;;  %s132_s0 = inlined_call_operand.hbm [shape: f32[8,256], index: 0, kind: input, shape index: {}]   ;;  %s133_s1 = inlined_call_operand.hbm [shape: f32[8,256], index: 1, kind: output, shape index: {}]  }
   0x1   :  { %7 = vsyncpa [#allocation4], 0  ;;  %s96_s6 = smov [#allocation2]   ;;  %s48_s10 = scalar_lea.hbm %s132_s0, 256 }
   0x2   :  { %s14_s7 = sshll.u32 %s96_s6, 4  ;;  %p49_p0 = scmp.ne.s32.totalorder %s132_s0, %s48_s10  ;;  %s15_s7 = int_to_ptr.vmem [resolvable:$true] %s14_s7 }
   0x3   :  { %p52_p1 = scmp.lt.u32.totalorder %s48_s10, %s132_s0 }
   0x5   :  { %p54_p2 = pnand %p52_p1, %p49_p0 }
   0x7   :  { %57 = shalt.err (!%p54_p2)
}
   0x8   :  { %s58_s15 = scalar_lea.vmem %s15_s7, 256  ;;  %p63_p4 = scmp.lt.s32.totalorder %s15_s7, %s15_s7 }
   0x9   :  { %p59_p3 = scmp.ne.s32.totalorder %s15_s7, %s58_s15  ;;  %p64_p5 = scmp.lt.s32.totalorder %s58_s15, %s58_s15 }
   0xb   :  { %p65_p6 = por %p64_p5, %p63_p4 }
   0xd   :  { %p66_p7 = pnand %p65_p6, %p59_p3 }
   0xf   :  { %69 = shalt.err (!%p66_p7)
}
  0x10   :  { %17 = dma.hbm_to_vmem [thread:$0]  %s132_s0, 256, %s15_s7, [#allocation3]  }
  0x11   :  { %92 = dma.done.wait [#allocation3], 256  }
  0x12   :  { %93 = vsyncadd [#allocation3], 4294967040  ;;  %v21_v0 = vld [vmem:[#allocation2] sm:$0xff]  ;;  %v22_v1 = vld [vmem:[#allocation2 + $0x8] sm:$0xff]  ;;  %s97_s18 = smov [#allocation5]  }
  0x13   :  { %v23_v2 = vadd.f32 %v22_v1, %v21_v0  ;;  %s37_s19 = sshll.u32 %s97_s18, 4  ;;  %s38_s19 = int_to_ptr.vmem [resolvable:$true] %s37_s19 }
  0x14   :  { %s70_s20 = scalar_lea.vmem %s38_s19, 256  ;;  %p75_p9 = scmp.lt.s32.totalorder %s38_s19, %s38_s19 }
  0x15   :  { %24 = vadd.xlane.f32.xlu0 %v23_v2  ;;  %p71_p8 = scmp.ne.s32.totalorder %s38_s19, %s70_s20  ;;  %p76_p10 = scmp.lt.s32.totalorder %s70_s20, %s70_s20 }
  0x17   :  { %p77_p11 = por %p76_p10, %p75_p9 }
  0x19   :  { %p78_p12 = pnand %p77_p11, %p71_p8 }
  0xa2   :  { %v25_v3 = vpop.xlane.xlu0 %24 }
  0xa3   :  { %v26_v4 = vmul.f32 0.00390625, %v25_v3 }
  0xa5   :  { %v27_v5 = vsub.f32 %v21_v0, %v26_v4  ;;  %v28_v6 = vsub.f32 %v22_v1, %v26_v4 }
  0xa7   :  { %29 = vst [vmem:[#allocation5] sm:$0xff] %v27_v5  ;;  %30 = vst [vmem:[#allocation5 + $0x8] sm:$0xff] %v28_v6 }
  0xa8   :  { %81 = shalt.err (!%p78_p12)
}
  0xa9   :  { %s82_s22 = scalar_lea.hbm %s133_s1, 256 }
  0xaa   :  { %p83_p13 = scmp.ne.s32.totalorder %s133_s1, %s82_s22  ;;  %p86_p0 = scmp.lt.u32.totalorder %s82_s22, %s133_s1 }
  0xac   :  { %p88_p1 = pnand %p86_p0, %p83_p13 }
  0xae   :  { %91 = shalt.err (!%p88_p1)
}
  0xaf   :  { %40 = dma.vmem_to_hbm [thread:$0]  %s38_s19, 256, %s133_s1, [#allocation4]  }
  0xb0   :  { %94 = dma.done.wait [#allocation4], 256  }
  0xb1   :  { %95 = vsyncadd [#allocation4], 4294967040 }
  0xb2   :  { %44 = vsyncpa [#allocation3], 1 }
  0xb3   :  { %45 = vsyncpa [#allocation4], 1 }

</bundles_post_ra>
